<compile_context>
chip_gen: v6e
topology: v6e:2x2x1
jax: 0.10.0
libtpu: 0.0.40
codegen_flags: <defaults>
</compile_context>

<pallas_src>
import functools

import jax
import jax.numpy as jnp
from jax import lax
from jax.experimental import pallas as pl
from jax.experimental.pallas import tpu as pltpu


def _round_up(n: int, m: int) -> int:
    return ((n + m - 1) // m) * m


def _tpu_budget():
    """Return (vmem_capacity_bytes, num_tensorcores_per_chip) with safe fallbacks."""
    try:
        kind = jax.devices()[0].device_kind.lower()
    except Exception:  # pragma: no cover - defensive
        kind = ""
    vmem_cap = None
    try:
        info = pltpu.get_tpu_info()
        vmem_cap = int(getattr(info, "vmem_capacity_bytes"))
    except Exception:
        vmem_cap = None
    if vmem_cap is None:
        vmem_cap = (64 << 20) if "v7" in kind else (128 << 20)
    n_tc = 1
    if "v7" in kind:
        n_tc = 2
        vmem_cap = min(vmem_cap, 64 << 20)   # per-TC VMEM on v7x
    return vmem_cap, n_tc


_VMEM_CAP_BYTES, _NUM_TC = _tpu_budget()


def _select_tiles(sp, b, n_out, dxp, dyp, comp_bytes, out_bytes, vmem_cap, n_tc):
    """Pick (TQ, TK): prefer big TQ (cuts y re-streaming), then big TK, within VMEM."""
    # Keep enough parallel grid extent so both TensorCores get work on 2-TC chips.
    tq_cap = sp
    if n_tc > 1 and (b * n_out) < n_tc and sp >= 256:
        tq_cap = sp // 2
    budget = int(vmem_cap * 0.70)   # leave headroom for compiler scratch / spills

    def footprint(tq, tk):
        return (2 * (tq * dxp + dxp * dyp + tk * dyp) * comp_bytes   # double-buffered ins
                + 2 * tq * tk * out_bytes                            # double-buffered out
                + tq * dyp * comp_bytes)                             # xw scratch

    candidates = [t for t in (2048, 1024, 512, 256, 128) if sp % t == 0] or [sp]
    for tq in candidates:
        if tq > tq_cap:
            continue
        for tk in candidates:
            if footprint(tq, tk) <= budget:
                return tq, tk
    t = candidates[-1]
    return t, t


def _biaffine_kernel(x_ref, w_ref, y_ref, o_ref, xw_ref):
    # x_ref : (TQ, Dxp)   w_ref : (Dxp, Dyp)   y_ref : (TK, Dyp)
    # o_ref : (TQ, TK)    xw_ref: (TQ, Dyp) VMEM scratch (cached per output row-tile)
    ki = pl.program_id(3)

    @pl.when(ki == 0)
    def _():
        xw = jnp.dot(x_ref[...], w_ref[...], preferred_element_type=jnp.float32)
        xw_ref[...] = xw.astype(xw_ref.dtype)

    # NT dot: contract the feature (last) dim of both operands — no transpose.
    s = lax.dot_general(
        xw_ref[...], y_ref[...],
        dimension_numbers=(((1,), (1,)), ((), ())),
        preferred_element_type=jnp.float32)
    o_ref[...] = s.astype(o_ref.dtype)


def _pad_features(a, has_bias: bool, d_pad: int, s_pad: int, dtype):
    """[B, S, n_in] -> [B, s_pad, d_pad]; ones column (if bias) lives inside the pad."""
    b, s, n_in = a.shape
    cols = [a.astype(dtype)]
    if has_bias:
        cols.append(jnp.ones((b, s, 1), dtype))
    extra = d_pad - n_in - int(has_bias)
    if extra > 0:
        cols.append(jnp.zeros((b, s, extra), dtype))
    out = jnp.concatenate(cols, axis=-1) if len(cols) > 1 else cols[0]
    if s_pad > s:
        out = jnp.pad(out, ((0, 0), (0, s_pad - s), (0, 0)))
    return out


@functools.partial(
    jax.jit,
    static_argnames=("bias_x", "bias_y", "compute_dtype", "out_dtype",
                     "tile_q", "tile_k"))
def biaffine(x, y, weight, *, bias_x=True, bias_y=True,
             compute_dtype=jnp.bfloat16, out_dtype=None,
             tile_q=None, tile_k=None):
    """x, y: [B, S, n_in]; weight: [n_out, n_in+bias_x, n_in+bias_y].

    Returns [B, n_out, S, S] (squeezed to [B, S, S] when n_out == 1).
    `out_dtype` (default: x.dtype) can be set to bf16 to halve the dominant
    S x S HBM writeback while keeping f32 accumulation inside the kernel.
    """
    B, S, n_in = x.shape
    n_out, Dx, Dy = weight.shape
    assert Dx == n_in + int(bias_x) and Dy == n_in + int(bias_y), (Dx, Dy, n_in)
    out_dtype = x.dtype if out_dtype is None else out_dtype

    # Lane-aligned padded dims: bias column folded into the feature pad, and the
    # sequence padded to a multiple of 128 so output stores are unmasked.
    Dxp = _round_up(Dx, 128)
    Dyp = _round_up(Dy, 128)
    Sp = _round_up(S, 128)

    # TODO(synk): weight padding (and optionally x/y concat+pad) could be cached /
    # fused producer-side instead of re-materialized per call.
    xp = _pad_features(x, bias_x, Dxp, Sp, compute_dtype)
    yp = _pad_features(y, bias_y, Dyp, Sp, compute_dtype)
    wp = jnp.pad(weight.astype(compute_dtype),
                 ((0, 0), (0, Dxp - Dx), (0, Dyp - Dy)))

    comp_bytes = jnp.dtype(compute_dtype).itemsize
    out_bytes = jnp.dtype(out_dtype).itemsize

    TQ, TK = _select_tiles(Sp, B, n_out, Dxp, Dyp, comp_bytes, out_bytes,
                           _VMEM_CAP_BYTES, _NUM_TC)
    if tile_q is not None:
        TQ = tile_q
    if tile_k is not None:
        TK = tile_k
    assert Sp % TQ == 0 and Sp % TK == 0, (Sp, TQ, TK)
    n_qt = Sp // TQ
    n_kt = Sp // TK

    # Grid order: put the output-channel axis outside the query-tile axis when that
    # keeps the (Dxp, Dyp) weight block resident longer than keeping x resident would.
    o_outer = (n_out == 1) or ((n_qt - 1) * Dyp > (n_out - 1) * TQ)
    if o_outer:
        grid = (B, n_out, n_qt, n_kt)
        x_map = lambda b, o, qi, ki: (b, qi, 0)
        w_map = lambda b, o, qi, ki: (o, 0, 0)
        y_map = lambda b, o, qi, ki: (b, ki, 0)
        o_map = lambda b, o, qi, ki: (b, o, qi, ki)
    else:
        grid = (B, n_qt, n_out, n_kt)
        x_map = lambda b, qi, o, ki: (b, qi, 0)
        w_map = lambda b, qi, o, ki: (o, 0, 0)
        y_map = lambda b, qi, o, ki: (b, ki, 0)
        o_map = lambda b, qi, o, ki: (b, o, qi, ki)

    # VMEM limit derived from the actual double-buffered footprint, capped per chip.
    vmem_needed = (2 * (TQ * Dxp + Dxp * Dyp + TK * Dyp) * comp_bytes
                   + 2 * TQ * TK * out_bytes
                   + TQ * Dyp * comp_bytes)
    vmem_limit = min(int(_VMEM_CAP_BYTES * 0.75),
                     max(vmem_needed + (4 << 20), 32 << 20))

    # Advisory cost estimate that accounts for re-streaming of y and W.
    x_read = B * Sp * Dxp * (n_out if o_outer else 1)
    w_read = n_out * Dxp * Dyp * (B if o_outer else B * n_qt)
    y_read = B * n_out * n_qt * Sp * Dyp
    bytes_accessed = ((x_read + w_read + y_read) * comp_bytes
                      + B * n_out * Sp * Sp * out_bytes)
    flops = 2 * B * n_out * (Sp * Dxp * Dyp + Sp * Sp * Dyp)

    out = pl.pallas_call(
        _biaffine_kernel,
        out_shape=jax.ShapeDtypeStruct((B, n_out, Sp, Sp), out_dtype),
        grid=grid,
        in_specs=[
            pl.BlockSpec((None, TQ, Dxp), x_map),
            pl.BlockSpec((None, Dxp, Dyp), w_map),
            pl.BlockSpec((None, TK, Dyp), y_map),
        ],
        out_specs=pl.BlockSpec((None, None, TQ, TK), o_map),
        scratch_shapes=[pltpu.VMEM((TQ, Dyp), compute_dtype)],
        compiler_params=pltpu.CompilerParams(
            dimension_semantics=("parallel", "parallel", "parallel", "arbitrary"),
            vmem_limit_bytes=vmem_limit),
        cost_estimate=pl.CostEstimate(
            flops=flops, transcendentals=0, bytes_accessed=bytes_accessed),
    )(xp, wp, yp)

    if Sp > S:
        out = out[:, :, :S, :S]
    if n_out == 1:
        out = jnp.squeeze(out, axis=1)
    return out


if __name__ == "__main__":
    # Small, deterministic inputs.
    B, S, n_in, n_out = 2, 8, 32, 2
    bias_x, bias_y = True, True

    key = jax.random.PRNGKey(0)
    kx, ky, kw = jax.random.split(key, 3)
    x = jax.random.normal(kx, (B, S, n_in), dtype=jnp.float32)
    y = jax.random.normal(ky, (B, S, n_in), dtype=jnp.float32)
    # NOTE: the PyTorch module's reset_parameters() zeros the weight, which gives a
    # trivially-zero output; we use a deterministic PRNG init instead so the kernel
    # computation is actually exercised.
    weight = jax.random.normal(
        kw, (n_out, n_in + int(bias_x), n_in + int(bias_y)), dtype=jnp.float32) * 0.1

    # Pure-JAX reference (mirrors the torch.einsum exactly).
    xb = jnp.concatenate([x, jnp.ones_like(x[..., :1])], -1)
    yb = jnp.concatenate([y, jnp.ones_like(y[..., :1])], -1)
    ref = jnp.einsum('bxi,oij,byj->boxy', xb, weight, yb)

    # f32 compute path: tight comparison against the reference.
    out_f32 = jax.block_until_ready(
        biaffine(x, y, weight, bias_x=bias_x, bias_y=bias_y,
                 compute_dtype=jnp.float32))
    assert out_f32.shape == ref.shape, (out_f32.shape, ref.shape)
    assert jnp.allclose(out_f32, ref, atol=1e-4, rtol=1e-4)

    # Default bf16 compute path, f32 output: looser tolerance.
    out_bf16 = jax.block_until_ready(
        biaffine(x, y, weight, bias_x=bias_x, bias_y=bias_y))
    assert out_bf16.shape == ref.shape
    assert jnp.allclose(out_bf16, ref, atol=1e-1, rtol=5e-2)

    # bf16 output path (halves the S x S writeback stream).
    out_bf16o = jax.block_until_ready(
        biaffine(x, y, weight, bias_x=bias_x, bias_y=bias_y,
                 out_dtype=jnp.bfloat16))
    assert out_bf16o.dtype == jnp.bfloat16
    assert jnp.allclose(out_bf16o.astype(jnp.float32), ref, atol=1.5e-1, rtol=5e-2)

    # Also exercise the n_out == 1 squeeze path (and the o_outer grid order).
    w1 = weight[:1]
    out1 = jax.block_until_ready(
        biaffine(x, y, w1, bias_x=bias_x, bias_y=bias_y,
                 compute_dtype=jnp.float32))
    ref1 = jnp.einsum('bxi,oij,byj->boxy', xb, w1, yb).squeeze(1)
    assert out1.shape == (B, S, S)
    assert jnp.allclose(out1, ref1, atol=1e-4, rtol=1e-4)

    print("KERNEL_OK")
</pallas_src>

<mosaic_0001>
module attributes {stable_mosaic.version = 11 : i64} {
  func.func @_biaffine_kernel(%arg0: i32, %arg1: i32, %arg2: i32, %arg3: i32, %arg4: memref<1x128x128xf32, #tpu.memory_space<vmem>>, %arg5: memref<1x128x128xf32, #tpu.memory_space<vmem>>, %arg6: memref<1x128x128xf32, #tpu.memory_space<vmem>>, %arg7: memref<1x1x128x128xf32, #tpu.memory_space<vmem>>, %arg8: memref<128x128xf32, #tpu.memory_space<vmem>>) attributes {dimension_semantics = [#tpu.dimension_semantics<parallel>, #tpu.dimension_semantics<parallel>, #tpu.dimension_semantics<parallel>, #tpu.dimension_semantics<arbitrary>], iteration_bounds = array<i64: 2, 1, 2, 1>, scalar_prefetch = 0 : i64, scratch_operands = 1 : i64, tpu.core_type = #tpu.core_type<tc>, window_params = [{transform_indices = @transform_0, window_bounds = array<i64: 1, 128, 128>}, {transform_indices = @transform_1, window_bounds = array<i64: 1, 128, 128>}, {transform_indices = @transform_2, window_bounds = array<i64: 1, 128, 128>}, {transform_indices = @transform_3, window_bounds = array<i64: 1, 1, 128, 128>}]} {
    %c0_i32 = arith.constant 0 : i32
    %0 = arith.cmpi eq, %arg3, %c0_i32 : i32
    %1 = arith.extui %0 : i1 to i32
    %c0_i32_0 = arith.constant 0 : i32
    %2 = arith.cmpi ne, %1, %c0_i32_0 : i32
    scf.if %2 {
      %c0_9 = arith.constant 0 : index
      %c0_10 = arith.constant 0 : index
      %c0_11 = arith.constant 0 : index
      %10 = vector.load %arg4[%c0_9, %c0_10, %c0_11] : memref<1x128x128xf32, #tpu.memory_space<vmem>>, vector<1x128x128xf32>
      %11 = vector.shape_cast %10 : vector<1x128x128xf32> to vector<128x128xf32>
      %c0_12 = arith.constant 0 : index
      %c0_13 = arith.constant 0 : index
      %c0_14 = arith.constant 0 : index
      %12 = vector.load %arg5[%c0_12, %c0_13, %c0_14] : memref<1x128x128xf32, #tpu.memory_space<vmem>>, vector<1x128x128xf32>
      %13 = vector.shape_cast %12 : vector<1x128x128xf32> to vector<128x128xf32>
      %cst_15 = arith.constant dense<0.000000e+00> : vector<128x128xf32>
      %14 = tpu.matmul %11, %13, %cst_15 {dimension_numbers = #tpu.dot_dimension_numbers<[1], [0], [0], [1], [0, 0, 1, 1], [], []>} : vector<128x128xf32>, vector<128x128xf32>, vector<128x128xf32> -> vector<128x128xf32>
      %c0_16 = arith.constant 0 : index
      %c0_17 = arith.constant 0 : index
      %15 = vector.load %arg8[%c0_16, %c0_17] : memref<128x128xf32, #tpu.memory_space<vmem>>, vector<128x128xf32>
      tpu.vector_store %arg8[%c0_16, %c0_17], %14 {strides = array<i32>} : memref<128x128xf32, #tpu.memory_space<vmem>>, vector<128x128xf32>,
    } else {
    }
    %c0 = arith.constant 0 : index
    %c0_1 = arith.constant 0 : index
    %3 = vector.load %arg8[%c0, %c0_1] : memref<128x128xf32, #tpu.memory_space<vmem>>, vector<128x128xf32>
    %c0_2 = arith.constant 0 : index
    %c0_3 = arith.constant 0 : index
    %c0_4 = arith.constant 0 : index
    %4 = vector.load %arg6[%c0_2, %c0_3, %c0_4] : memref<1x128x128xf32, #tpu.memory_space<vmem>>, vector<1x128x128xf32>
    %5 = vector.shape_cast %4 : vector<1x128x128xf32> to vector<128x128xf32>
    %cst = arith.constant dense<0.000000e+00> : vector<128x128xf32>
    %6 = tpu.matmul %3, %5, %cst {dimension_numbers = #tpu.dot_dimension_numbers<[1], [1], [0], [0], [0, 0, 1, 0], [], []>} : vector<128x128xf32>, vector<128x128xf32>, vector<128x128xf32> -> vector<128x128xf32>
    %c0_5 = arith.constant 0 : index
    %c0_6 = arith.constant 0 : index
    %c0_7 = arith.constant 0 : index
    %c0_8 = arith.constant 0 : index
    %7 = vector.load %arg7[%c0_5, %c0_6, %c0_7, %c0_8] : memref<1x1x128x128xf32, #tpu.memory_space<vmem>>, vector<1x1x128x128xf32>
    %8 = vector.shape_cast %7 : vector<1x1x128x128xf32> to vector<128x128xf32>
    %9 = vector.shape_cast %6 : vector<128x128xf32> to vector<1x1x128x128xf32>
    tpu.vector_store %arg7[%c0_5, %c0_6, %c0_7, %c0_8], %9 {strides = array<i32>} : memref<1x1x128x128xf32, #tpu.memory_space<vmem>>, vector<1x1x128x128xf32>,
    return
  }
  func.func @transform_0(%arg0: i32, %arg1: i32, %arg2: i32, %arg3: i32) -> (i32, i32, i32) {
    %c0_i32 = arith.constant 0 : i32
    %c0_i32_0 = arith.constant 0 : i32
    return %arg0, %arg1, %c0_i32 : i32, i32, i32
  }
  func.func @transform_1(%arg0: i32, %arg1: i32, %arg2: i32, %arg3: i32) -> (i32, i32, i32) {
    %c0_i32 = arith.constant 0 : i32
    %c0_i32_0 = arith.constant 0 : i32
    %c0_i32_1 = arith.constant 0 : i32
    return %arg2, %c0_i32, %c0_i32_0 : i32, i32, i32
  }
  func.func @transform_2(%arg0: i32, %arg1: i32, %arg2: i32, %arg3: i32) -> (i32, i32, i32) {
    %c0_i32 = arith.constant 0 : i32
    %c0_i32_0 = arith.constant 0 : i32
    return %arg0, %arg3, %c0_i32 : i32, i32, i32
  }
  func.func @transform_3(%arg0: i32, %arg1: i32, %arg2: i32, %arg3: i32) -> (i32, i32, i32, i32) {
    %c0_i32 = arith.constant 0 : i32
    return %arg0, %arg2, %arg1, %arg3 : i32, i32, i32, i32
  }
}

</mosaic_0001>

<bundles_post_ra>
// kernel: biaffine.1
= control target key start
LH: loop header
LB: loop body
LE: loop exit
PB: predicated region body
PF: predicated region fallthrough
CT: control target
= control target key end

     0   :  { %s1135_s12 = smov 0   ;;  %s1137_s13 = smov 0   ;;  %s1272_s0 = inlined_call_operand.vmem [shape: f32[2,128,128], index: 0, kind: input, shape index: {}]   ;;  %s1273_s1 = inlined_call_operand.vmem [shape: f32[2,128,128], index: 1, kind: input, shape index: {}]   ;;  %s1274_s2 = inlined_call_operand.vmem [shape: f32[2,128,128], index: 2, kind: input, shape index: {}]   ;;  %s1275_s3 = inlined_call_operand.vmem [shape: f32[2,2,128,128], index: 3, kind: output, shape index: {}]  }
   0x1   :  { %s1139_s14 = smov 0   ;;  %s1141_s15 = smov 0  }
   0x2   :  { %s1143_s16 = smov 0  }
   0x3 LB: > { %s31_s17 = sadd.s32 1, %s1105_s14  ;;  %s39_s18 = sadd.s32 1, %s1109_s15  ;;  %s1113_s16 = sphi %s1143_s16, %s13_s16   ;;  %s1109_s15 = sphi %s1141_s15, %s1279_s15   ;;  %s1105_s14 = sphi %s1139_s14, %s1278_s14   ;;  %s1101_s13 = sphi %s1137_s13, %s1277_s13   ;;  %s1097_s12 = sphi %s1135_s12, %s1276_s12  }
   0x4   : > { %p33_p0 = scmp.ge.s32.totalorder %s31_s17, 2  ;;  %p844_p1 = scmp.ge.s32.totalorder %s1113_s16, 1 }
   0x5   : > { %p203_p2 = scmp.lt.s32.totalorder %s1113_s16, 5 }
   0x6   : > { %s1281_s17 = smov (%p33_p0, %s31_s17), 0  ;;  %s1283_s18 = smov (!%p33_p0, %s39_s18), %s1109_s15 }
   0x7   : > { %p204_p3 = pnand %p844_p1, %p203_p2  ;;  %p41_p4 = scmp.ge.s32.totalorder %s1283_s18, 2 }
   0x8   : > { %p266_p5 = scmp.lt.s32.totalorder (!%p204_p3), %s1097_s12, 1  ;;  %p257_p6 = scmp.lt.s32.totalorder (!%p204_p3), %s1101_s13, 1 }
   0x9   : > { %s1285_s18 = smov (%p41_p4, %s1283_s18), 0  ;;  %207 = sbr.rel (%p204_p3) target bundleno = 470 (0x1d6), region = 32 }
   0xe   : > { %s1287_s12 = smov (!%p266_p5, %s1097_s12), 1  ;;  %s1289_s13 = smov (!%p257_p6, %s1101_s13), 1 }
   0xf   : > { %s857_s19 = sshll.u32 %s1287_s12, 7  ;;  %s856_s23 = sshll.u32 %s1289_s13, 7 }
  0x10   : > { %s1173_s22 = scalar_lea.vmem %s1273_s1, %s857_s19  ;;  %s1182_s26 = scalar_lea.vmem %s1272_s0, %s856_s23 }
  0x11   : > { %v333_v0 = vld [vmem:[%s1173_s22 + $0x78] sm:$0xff]  ;;  %v332_v1 = vld [vmem:[%s1173_s22 + $0x70] sm:$0xff]  ;;  %v331_v2 = vld [vmem:[%s1173_s22 + $0x68] sm:$0xff]  ;;  %s1190_s29 = scalar_lea.vmem %s1274_s2, %s856_s23  ;;  %s851_s30 = sshll.u32 %s1287_s12, 4 }
  0x12   : > { %923 = vmatprep.subr.mxu0 %v333_v0  ;;  %v330_v3 = vld [vmem:[%s1173_s22 + $0x60] sm:$0xff]  ;;  %v329_v5 = vld [vmem:[%s1173_s22 + $0x58] sm:$0xff]  ;;  %v328_v6 = vld [vmem:[%s1173_s22 + $0x50] sm:$0xff]  ;;  %s852_s4 = sshll.u32 %s1289_s13, 5 }
  0x13   : > { %924 = vmatpush3.msra.mxu0 %v333_v0  ;;  %v302_v4 = vld [vmem:[%s1182_s26] sm:$0xff]  ;;  %v327_v7 = vld [vmem:[%s1173_s22 + $0x48] sm:$0xff]  ;;  %v526_v8 = vld [vmem:[%s1190_s29 + $0x78] sm:$0xff]  ;;  %s294_s5 = sadd.s32 %s852_s4, %s851_s30 }
  0x14   : > { %925 = vmatprep.subr.mxu0 %v332_v1  ;;  %955 = vmatprep.mubr.f32.mxu0 %v302_v4  ;;  %v525_v9 = vld [vmem:[%s1190_s29 + $0x70] sm:$0xff]  ;;  %v326_v10 = vld [vmem:[%s1173_s22 + $0x40] sm:$0xff]  ;;  %v325_v11 = vld [vmem:[%s1173_s22 + $0x38] sm:$0xff]  ;;  %s853_s6 = sshll.u32 %s294_s5, 3 }
  0x15   : > { %926 = vmatpush3.msra.mxu0 %v332_v1  ;;  %979 = vmatprep.subr.mxu1 %v526_v8  ;;  %v524_v12 = vld [vmem:[%s1190_s29 + $0x68] sm:$0xff]  ;;  %v324_v13 = vld [vmem:[%s1173_s22 + $0x30] sm:$0xff]  ;;  %v523_v15 = vld [vmem:[%s1190_s29 + $0x60] sm:$0xff]  ;;  %s1239_s9 = scalar_lea.vmem %s1275_s3, %s853_s6 }
  0x16   : > { %927 = vmatprep.subr.mxu0 %v331_v2  ;;  %980 = vmatpush3.xpose.msra.mxu1 %v526_v8  ;;  %v323_v14 = vld [vmem:[%s1173_s22 + $0x28] sm:$0xff]  ;;  %v322_v16 = vld [vmem:[%s1173_s22 + $0x20] sm:$0xff]  ;;  %v321_v17 = vld [vmem:[%s1173_s22 + $0x18] sm:$0xff] }
  0x17   : > { %928 = vmatpush3.msra.mxu0 %v331_v2  ;;  %981 = vmatprep.subr.mxu1 %v525_v9  ;;  %v522_v18 = vld [vmem:[%s1190_s29 + $0x58] sm:$0xff]  ;;  %v320_v19 = vld [vmem:[%s1173_s22 + $0x10] sm:$0xff]  ;;  %v319_v20 = vld [vmem:[%s1173_s22 + $0x8] sm:$0xff] }
  0x18   : > { %929 = vmatprep.subr.mxu0 %v330_v3  ;;  %v521_v21 = vld [vmem:[%s1190_s29 + $0x50] sm:$0xff]  ;;  %v318_v22 = vld [vmem:[%s1173_s22] sm:$0xff]  ;;  %v303_v23 = vld [vmem:[%s1182_s26 + $0x8] sm:$0xff] }
  0x19   : > { %930 = vmatpush3.msra.mxu0 %v330_v3  ;;  %v520_v24 = vld [vmem:[%s1190_s29 + $0x48] sm:$0xff]  ;;  %v304_v25 = vld [vmem:[%s1182_s26 + $0x10] sm:$0xff]  ;;  %v305_v26 = vld [vmem:[%s1182_s26 + $0x18] sm:$0xff] }
  0x1a   : > { %931 = vmatprep.subr.mxu0 %v329_v5  ;;  %982 = vmatpush3.xpose.msra.mxu1 %v525_v9  ;;  %v519_v27 = vld [vmem:[%s1190_s29 + $0x40] sm:$0xff]  ;;  %v307_v29 = vld [vmem:[%s1182_s26 + $0x28] sm:$0xff]  ;;  %v518_v30 = vld [vmem:[%s1190_s29 + $0x38] sm:$0xff] }
  0x1b   : > { %932 = vmatpush3.msra.mxu0 %v329_v5  ;;  %983 = vmatprep.subr.mxu1 %v524_v12  ;;  %v306_v28 = vld [vmem:[%s1182_s26 + $0x20] sm:$0xff]  ;;  %v308_v31 = vld [vmem:[%s1182_s26 + $0x30] sm:$0xff]  ;;  %v309_v32 = vld [vmem:[%s1182_s26 + $0x38] sm:$0xff] }
  0x1c   : > { %933 = vmatprep.subr.mxu0 %v328_v6  ;;  %v517_v33 = vld [vmem:[%s1190_s29 + $0x30] sm:$0xff]  ;;  %v310_v34 = vld [vmem:[%s1182_s26 + $0x40] sm:$0xff]  ;;  %v311_v35 = vld [vmem:[%s1182_s26 + $0x48] sm:$0xff] }
  0x1d   : > { %934 = vmatpush3.msra.mxu0 %v328_v6  ;;  %v516_v36 = vld [vmem:[%s1190_s29 + $0x28] sm:$0xff]  ;;  %v312_v37 = vld [vmem:[%s1182_s26 + $0x50] sm:$0xff]  ;;  %v313_v38 = vld [vmem:[%s1182_s26 + $0x58] sm:$0xff] }
  0x1e   : > { %935 = vmatprep.subr.mxu0 %v327_v7  ;;  %984 = vmatpush3.xpose.msra.mxu1 %v524_v12  ;;  %v515_v39 = vld [vmem:[%s1190_s29 + $0x20] sm:$0xff]  ;;  %v315_v41 = vld [vmem:[%s1182_s26 + $0x68] sm:$0xff]  ;;  %v514_v42 = vld [vmem:[%s1190_s29 + $0x18] sm:$0xff] }
  0x1f   : > { %936 = vmatpush3.msra.mxu0 %v327_v7  ;;  %985 = vmatprep.subr.mxu1 %v523_v15  ;;  %v314_v40 = vld [vmem:[%s1182_s26 + $0x60] sm:$0xff]  ;;  %v316_v43 = vld [vmem:[%s1182_s26 + $0x70] sm:$0xff]  ;;  %v317_v44 = vld [vmem:[%s1182_s26 + $0x78] sm:$0xff] }
  0x20   : > { %937 = vmatprep.subr.mxu0 %v326_v10  ;;  %v513_v45 = vld [vmem:[%s1190_s29 + $0x10] sm:$0xff]  ;;  %v512_v46 = vld [vmem:[%s1190_s29 + $0x8] sm:$0xff]  ;;  %v511_v47 = vld [vmem:[%s1190_s29] sm:$0xff] }
  0x21   : > { %938 = vmatpush3.msra.mxu0 %v326_v10 }
  0x22   : > { %939 = vmatprep.subr.mxu0 %v325_v11  ;;  %986 = vmatpush3.xpose.msra.mxu1 %v523_v15 }
  0x23   : > { %940 = vmatpush3.msra.mxu0 %v325_v11  ;;  %987 = vmatprep.subr.mxu1 %v522_v18 }
  0x24   : > { %941 = vmatprep.subr.mxu0 %v324_v13 }
  0x25   : > { %942 = vmatpush3.msra.mxu0 %v324_v13 }
  0x26   : > { %943 = vmatprep.subr.mxu0 %v323_v14  ;;  %988 = vmatpush3.xpose.msra.mxu1 %v522_v18 }
  0x27   : > { %944 = vmatpush3.msra.mxu0 %v323_v14  ;;  %989 = vmatprep.subr.mxu1 %v521_v21 }
  0x28   : > { %945 = vmatprep.subr.mxu0 %v322_v16 }
  0x29   : > { %946 = vmatpush3.msra.mxu0 %v322_v16 }
  0x2a   : > { %947 = vmatprep.subr.mxu0 %v321_v17  ;;  %990 = vmatpush3.xpose.msra.mxu1 %v521_v21 }
  0x2b   : > { %948 = vmatpush3.msra.mxu0 %v321_v17  ;;  %991 = vmatprep.subr.mxu1 %v520_v24 }
  0x2c   : > { %949 = vmatprep.subr.mxu0 %v320_v19 }
  0x2d   : > { %950 = vmatpush3.msra.mxu0 %v320_v19 }
  0x2e   : > { %951 = vmatprep.subr.mxu0 %v319_v20  ;;  %992 = vmatpush3.xpose.msra.mxu1 %v520_v24 }
  0x2f   : > { %952 = vmatpush3.msra.mxu0 %v319_v20  ;;  %993 = vmatprep.subr.mxu1 %v519_v27 }
  0x30   : > { %953 = vmatprep.subr.mxu0 %v318_v22 }
  0x31   : > { %954 = vmatpush3.msra.mxu0 %v318_v22 }
  0x32   : > { %956 = vmatmul.mubr.f32.vlgmr.msra.gmra.mxu0 %v303_v23  ;;  %994 = vmatpush3.xpose.msra.mxu1 %v519_v27 }
  0x33   : > { %958 = vmatprep.mubr.f32.mxu0 %v304_v25  ;;  %995 = vmatprep.subr.mxu1 %v518_v30 }
  0x36   : > { %959 = vmatmul.mubr.f32.gmra.mxu0 %v305_v26  ;;  %996 = vmatpush3.xpose.msra.mxu1 %v518_v30 }
  0x37   : > { %961 = vmatprep.mubr.f32.mxu0 %v306_v28  ;;  %997 = vmatprep.subr.mxu1 %v517_v33 }
  0x3a   : > { %962 = vmatmul.mubr.f32.gmra.mxu0 %v307_v29  ;;  %998 = vmatpush3.xpose.msra.mxu1 %v517_v33 }
  0x3b   : > { %964 = vmatprep.mubr.f32.mxu0 %v308_v31  ;;  %999 = vmatprep.subr.mxu1 %v516_v36 }
  0x3e   : > { %965 = vmatmul.mubr.f32.gmra.mxu0 %v309_v32  ;;  %1000 = vmatpush3.xpose.msra.mxu1 %v516_v36 }
  0x3f   : > { %967 = vmatprep.mubr.f32.mxu0 %v310_v34  ;;  %1001 = vmatprep.subr.mxu1 %v515_v39 }
  0x42   : > { %968 = vmatmul.mubr.f32.gmra.mxu0 %v311_v35  ;;  %1002 = vmatpush3.xpose.msra.mxu1 %v515_v39 }
  0x43   : > { %970 = vmatprep.mubr.f32.mxu0 %v312_v37  ;;  %1003 = vmatprep.subr.mxu1 %v514_v42 }
  0x46   : > { %971 = vmatmul.mubr.f32.gmra.mxu0 %v313_v38  ;;  %1004 = vmatpush3.xpose.msra.mxu1 %v514_v42 }
  0x47   : > { %973 = vmatprep.mubr.f32.mxu0 %v314_v40  ;;  %1005 = vmatprep.subr.mxu1 %v513_v45 }
  0x4a   : > { %974 = vmatmul.mubr.f32.gmra.mxu0 %v315_v41  ;;  %1006 = vmatpush3.xpose.msra.mxu1 %v513_v45 }
  0x4b   : > { %976 = vmatprep.mubr.f32.mxu0 %v316_v43  ;;  %1007 = vmatprep.subr.mxu1 %v512_v46 }
  0x4e   : > { %977 = vmatmul.mubr.f32.gmra.mxu0 %v317_v44  ;;  %1008 = vmatpush3.xpose.msra.mxu1 %v512_v46 }
  0x4f   : > { %1009 = vmatprep.subr.mxu1 %v511_v47 }
  0x52   : > { %1010 = vmatpush3.xpose.msra.mxu1 %v511_v47 }
  0xf2   : > { %v957_v48 = vpop.f32.mrf.mxu0 }
  0xf4   : > { %v400_v49 = vpop.f32.mrf.mxu0 }
  0xf5   : > { %1011 = vmatprep.mubr.f32.mxu1 %v400_v49 }
  0xf6   : > { %v960_v50 = vpop.f32.mrf.mxu0  ;;  %1012 = vmatmul.mubr.f32.vlgmr.msra.gmra.mxu1 %v957_v48 }
  0xf8   : > { %v410_v51 = vpop.f32.mrf.mxu0 }
  0xf9   : > { %1014 = vmatprep.mubr.f32.mxu1 %v410_v51 }
  0xfa   : > { %v963_v52 = vpop.f32.mrf.mxu0  ;;  %1015 = vmatmul.mubr.f32.gmra.mxu1 %v960_v50 }
  0xfc   : > { %v420_v53 = vpop.f32.mrf.mxu0 }
  0xfd   : > { %1017 = vmatprep.mubr.f32.mxu1 %v420_v53 }
  0xfe   : > { %v966_v54 = vpop.f32.mrf.mxu0  ;;  %1018 = vmatmul.mubr.f32.gmra.mxu1 %v963_v52 }
 0x100   : > { %v430_v55 = vpop.f32.mrf.mxu0 }
 0x101   : > { %1020 = vmatprep.mubr.f32.mxu1 %v430_v55 }
 0x102   : > { %v969_v56 = vpop.f32.mrf.mxu0  ;;  %1021 = vmatmul.mubr.f32.gmra.mxu1 %v966_v54 }
 0x104   : > { %v440_v57 = vpop.f32.mrf.mxu0 }
 0x105   : > { %1023 = vmatprep.mubr.f32.mxu1 %v440_v57 }
 0x106   : > { %v972_v58 = vpop.f32.mrf.mxu0  ;;  %1024 = vmatmul.mubr.f32.gmra.mxu1 %v969_v56 }
 0x108   : > { %v450_v59 = vpop.f32.mrf.mxu0 }
 0x109   : > { %1026 = vmatprep.mubr.f32.mxu1 %v450_v59 }
 0x10a   : > { %v975_v60 = vpop.f32.mrf.mxu0  ;;  %1027 = vmatmul.mubr.f32.gmra.mxu1 %v972_v58 }
 0x10c   : > { %v460_v61 = vpop.f32.mrf.mxu0 }
 0x10d   : > { %1029 = vmatprep.mubr.f32.mxu1 %v460_v61 }
 0x10e   : > { %v978_v62 = vpop.f32.mrf.mxu0  ;;  %1030 = vmatmul.mubr.f32.gmra.mxu1 %v975_v60 }
 0x110   : > { %v470_v63 = vpop.f32.mrf.mxu0 }
 0x111   : > { %1032 = vmatprep.mubr.f32.mxu1 %v470_v63 }
 0x112   : > { %1033 = vmatmul.mubr.f32.gmra.mxu1 %v978_v62 }
 0x1b6   : > { %v1013_v0 = vpop.f32.mrf.mxu1 }
 0x1b7   : > { %673 = vst [vmem:[%s1239_s9 + $0x8] sm:$0xff] %v1013_v0 }
 0x1b8   : > { %v593_v1 = vpop.f32.mrf.mxu1 }
 0x1b9   : > { %672 = vst [vmem:[%s1239_s9] sm:$0xff] %v593_v1 }
 0x1ba   : > { %v1016_v2 = vpop.f32.mrf.mxu1 }
 0x1bb   : > { %675 = vst [vmem:[%s1239_s9 + $0x18] sm:$0xff] %v1016_v2 }
 0x1bc   : > { %v603_v3 = vpop.f32.mrf.mxu1 }
 0x1bd   : > { %674 = vst [vmem:[%s1239_s9 + $0x10] sm:$0xff] %v603_v3 }
 0x1be   : > { %v1019_v4 = vpop.f32.mrf.mxu1 }
 0x1bf   : > { %677 = vst [vmem:[%s1239_s9 + $0x28] sm:$0xff] %v1019_v4 }
 0x1c0   : > { %v613_v5 = vpop.f32.mrf.mxu1 }
 0x1c1   : > { %676 = vst [vmem:[%s1239_s9 + $0x20] sm:$0xff] %v613_v5 }
 0x1c2   : > { %v1022_v6 = vpop.f32.mrf.mxu1 }
 0x1c3   : > { %679 = vst [vmem:[%s1239_s9 + $0x38] sm:$0xff] %v1022_v6 }
 0x1c4   : > { %v623_v7 = vpop.f32.mrf.mxu1 }
 0x1c5   : > { %678 = vst [vmem:[%s1239_s9 + $0x30] sm:$0xff] %v623_v7 }
 0x1c6   : > { %v1025_v8 = vpop.f32.mrf.mxu1 }
 0x1c7   : > { %681 = vst [vmem:[%s1239_s9 + $0x48] sm:$0xff] %v1025_v8 }
 0x1c8   : > { %v633_v9 = vpop.f32.mrf.mxu1 }
 0x1c9   : > { %680 = vst [vmem:[%s1239_s9 + $0x40] sm:$0xff] %v633_v9 }
 0x1ca   : > { %v1028_v10 = vpop.f32.mrf.mxu1 }
 0x1cb   : > { %683 = vst [vmem:[%s1239_s9 + $0x58] sm:$0xff] %v1028_v10 }
 0x1cc   : > { %v643_v11 = vpop.f32.mrf.mxu1 }
 0x1cd   : > { %682 = vst [vmem:[%s1239_s9 + $0x50] sm:$0xff] %v643_v11 }
 0x1ce   : > { %v1031_v12 = vpop.f32.mrf.mxu1 }
 0x1cf   : > { %685 = vst [vmem:[%s1239_s9 + $0x68] sm:$0xff] %v1031_v12 }
 0x1d0   : > { %v653_v13 = vpop.f32.mrf.mxu1 }
 0x1d1   : > { %684 = vst [vmem:[%s1239_s9 + $0x60] sm:$0xff] %v653_v13 }
 0x1d2   : > { %v1034_v14 = vpop.f32.mrf.mxu1 }
 0x1d3   : > { %687 = vst [vmem:[%s1239_s9 + $0x78] sm:$0xff] %v1034_v14 }
 0x1d4   : > { %v663_v15 = vpop.f32.mrf.mxu1 }
 0x1d5   : > { %686 = vst [vmem:[%s1239_s9 + $0x70] sm:$0xff] %v663_v15 }
 0x1d6 PF: > { %s13_s16 = sadd.s32 1, %s1113_s16   ;;  %s1276_s12 = smov %s1105_s14 }
 0x1d7   : > { %p10_p7 = scmp.ge.s32.totalorder %s13_s16, 6   ;;  %s1277_s13 = smov %s1109_s15 }
 0x1d8   : > { %s1278_s14 = smov %s1281_s17  ;;  %s1279_s15 = smov %s1285_s18 }
 0x1d9   :  { %12 = sbr.rel (!%p10_p7) target bundleno = 3 (0x3), region = 72 }

</bundles_post_ra>
